<compile_context>
chip_gen: v7x
topology: tpu7x:2x2x1
jax: 0.10.0
libtpu: 0.0.40
codegen_flags: <defaults>
</compile_context>

<pallas_src>
import functools
import math

import jax
import jax.numpy as jnp
from jax.experimental import pallas as pl
from jax.experimental.pallas import tpu as pltpu

_LANE = 128
_TARGET_BLOCK_BYTES = 2 * 1024 * 1024   # ~2 MiB per x/out block (review: 1-4 MiB sweet spot)


def _round_up(n, m):
    return ((n + m - 1) // m) * m


def _choose_tiles(batch, d_model, t_pad, x_itemsize):
    """Pick (b_blk, t_blk) so each grid step moves ~_TARGET_BLOCK_BYTES.

    t_blk is a multiple of 128 dividing t_pad (lane-dense, no ragged T blocks);
    b_blk divides batch.  Worst-case pipelined VMEM: 2*(x)+2*(out)+2*(pe)
    <= ~12 MiB, safe under the default scoped limit on v5e/v6e/v7x.
    """
    col_bytes = d_model * max(x_itemsize, 4)            # pe columns are always f32
    if col_bytes * t_pad <= _TARGET_BLOCK_BYTES:
        t_blk = t_pad                                    # whole padded sequence in one lane tile
    else:
        t_blk = max(_LANE, (_TARGET_BLOCK_BYTES // (col_bytes * _LANE)) * _LANE)
        while t_blk > _LANE and t_pad % t_blk != 0:
            t_blk -= _LANE
    b_bytes = d_model * t_blk * x_itemsize
    b_blk = int(max(1, min(batch, _TARGET_BLOCK_BYTES // max(b_bytes, 1))))
    while b_blk > 1 and batch % b_blk != 0:
        b_blk -= 1
    return b_blk, t_blk


def _pos_enc_kernel(x_ref, pe_ref, o_ref, *, scale):
    # x_ref/o_ref: (b_blk, D, t_blk); pe_ref: (D, t_blk).
    # One fused multiply-add per vreg on the VPU; compute in f32, cast on store
    # so bf16 I/O keeps f32 accuracy (review correctness note).
    x = x_ref[...].astype(jnp.float32)
    pe = pe_ref[...].astype(jnp.float32)
    o_ref[...] = (x * scale + pe[None, :, :]).astype(o_ref.dtype)


def make_positional_encoding(d_model, max_seq_len=512):
    """Matches the torch __init__ double loop exactly: the exponent uses the RAW
    channel index c for both sin (even c) and cos (odd c) entries."""
    c = jnp.arange(d_model, dtype=jnp.float32)[:, None]           # (D, 1)
    pos = jnp.arange(max_seq_len, dtype=jnp.float32)[None, :]     # (1, L)
    angle = pos / jnp.power(10000.0, 2.0 * c / d_model)           # (D, L)
    even = (jnp.arange(d_model)[:, None] % 2) == 0
    return jnp.where(even, jnp.sin(angle), jnp.cos(angle)).astype(jnp.float32)


def positional_encoder_forward(x, pe, d_model=None, *, donate_x=False):
    """out = x * sqrt(d_model) + pe[:, :seq_len]   with x: (B, d_model, seq_len)."""
    if x.ndim != 3:
        raise ValueError(f"expected x of shape (B, d_model, seq_len), got {x.shape}")
    B, D, T = x.shape
    if d_model is None:
        d_model = D
    if pe.shape[0] != D:
        raise ValueError(f"pe has {pe.shape[0]} channels but x has {D}")
    if T > pe.shape[1]:
        raise ValueError(f"seq_len={T} exceeds positional table max_seq_len={pe.shape[1]}")

    scale = math.sqrt(d_model)
    itemsize = jnp.dtype(x.dtype).itemsize

    # Lane-dense padding of the sequence axis (unmasked full `vst` stores).
    t_pad = _round_up(T, _LANE)
    b_blk, t_blk = _choose_tiles(B, D, t_pad, itemsize)
    n_b, n_t = B // b_blk, t_pad // t_blk

    x_p = x if t_pad == T else jnp.pad(x, ((0, 0), (0, 0), (0, t_pad - T)))
    pe_f32 = pe.astype(jnp.float32)
    if pe_f32.shape[1] < t_pad:       # only for exotic (non-multiple-of-128) max_seq_len
        pe_f32 = jnp.pad(pe_f32, ((0, 0), (0, t_pad - pe_f32.shape[1])))
    # NOTE: no pe[:, :T] slice here -- the BlockSpec below windows the full table.

    kernel = functools.partial(_pos_enc_kernel, scale=scale)
    cost = pl.CostEstimate(
        flops=2 * B * D * T,
        bytes_accessed=2 * B * D * T * itemsize + D * T * 4,
        transcendentals=0,
    )
    aliases = {0: 0} if (donate_x and t_pad == T) else {}

    out = pl.pallas_call(
        kernel,
        out_shape=jax.ShapeDtypeStruct((B, D, t_pad), x.dtype),
        grid=(n_b, n_t),
        in_specs=[
            pl.BlockSpec((b_blk, D, t_blk), lambda b, t: (b, 0, t)),   # x tile
            pl.BlockSpec((D, t_blk), lambda b, t: (0, t)),             # pe window (const over b)
        ],
        out_specs=pl.BlockSpec((b_blk, D, t_blk), lambda b, t: (b, 0, t)),
        compiler_params=pltpu.CompilerParams(
            dimension_semantics=("parallel", "parallel")),             # megacore-shardable axes
        cost_estimate=cost,
        input_output_aliases=aliases,
    )(x_p, pe_f32)

    return out if t_pad == T else out[:, :, :T]


# ----------------------------------------------------------------------------
if __name__ == "__main__":
    d_model, max_seq_len = 32, 512
    B, seq_len = 2, 100        # non-multiple-of-128 -> exercises the lane-padding path

    key = jax.random.PRNGKey(0)
    x = jax.random.normal(key, (B, d_model, seq_len), jnp.float32)   # torch NCW input
    pe = make_positional_encoding(d_model, max_seq_len)

    fwd = jax.jit(functools.partial(positional_encoder_forward, d_model=d_model))

    # f32 path
    out = jax.block_until_ready(fwd(x, pe))
    ref = x * math.sqrt(d_model) + pe[None, :, :seq_len]
    assert out.shape == (B, d_model, seq_len), out.shape
    assert bool(jnp.all(jnp.isfinite(out)))
    assert bool(jnp.allclose(out, ref, atol=1e-5, rtol=1e-5))

    # bf16 I/O path (kernel still computes in f32, casts on store -> half the HBM bytes)
    xb = x.astype(jnp.bfloat16)
    outb = jax.block_until_ready(fwd(xb, pe))
    refb = (xb.astype(jnp.float32) * math.sqrt(d_model) + pe[None, :, :seq_len]).astype(jnp.bfloat16)
    assert outb.dtype == jnp.bfloat16 and outb.shape == (B, d_model, seq_len)
    assert bool(jnp.allclose(outb.astype(jnp.float32), refb.astype(jnp.float32),
                             atol=3e-2, rtol=3e-2))

    print("KERNEL_OK")
</pallas_src>

<mosaic_0001>
module attributes {stable_mosaic.version = 11 : i64} {
  func.func @_pos_enc_kernel(%arg0: i32, %arg1: i32, %arg2: memref<2x32x128xf32, #tpu.memory_space<vmem>>, %arg3: memref<32x128xf32, #tpu.memory_space<vmem>>, %arg4: memref<2x32x128xf32, #tpu.memory_space<vmem>>) attributes {dimension_semantics = [#tpu.dimension_semantics<parallel>, #tpu.dimension_semantics<parallel>], iteration_bounds = array<i64: 1, 1>, scalar_prefetch = 0 : i64, scratch_operands = 0 : i64, tpu.core_type = #tpu.core_type<tc>, window_params = [{transform_indices = @transform_0, window_bounds = array<i64: 2, 32, 128>}, {transform_indices = @transform_1, window_bounds = array<i64: 32, 128>}, {transform_indices = @transform_2, window_bounds = array<i64: 2, 32, 128>}]} {
    %c0 = arith.constant 0 : index
    %c0_0 = arith.constant 0 : index
    %c0_1 = arith.constant 0 : index
    %0 = vector.load %arg2[%c0, %c0_0, %c0_1] : memref<2x32x128xf32, #tpu.memory_space<vmem>>, vector<2x32x128xf32>
    %c0_2 = arith.constant 0 : index
    %c0_3 = arith.constant 0 : index
    %1 = vector.load %arg3[%c0_2, %c0_3] : memref<32x128xf32, #tpu.memory_space<vmem>>, vector<32x128xf32>
    %cst = arith.constant 5.65685415 : f32
    %2 = vector.broadcast %cst : f32 to vector<2x32x128xf32>
    %3 = arith.mulf %0, %2 : vector<2x32x128xf32>
    %4 = vector.shape_cast %1 : vector<32x128xf32> to vector<1x32x128xf32>
    %5 = vector.broadcast %4 : vector<1x32x128xf32> to vector<2x32x128xf32>
    %6 = arith.addf %3, %5 : vector<2x32x128xf32>
    %c0_4 = arith.constant 0 : index
    %c0_5 = arith.constant 0 : index
    %c0_6 = arith.constant 0 : index
    %7 = vector.load %arg4[%c0_4, %c0_5, %c0_6] : memref<2x32x128xf32, #tpu.memory_space<vmem>>, vector<2x32x128xf32>
    tpu.vector_store %arg4[%c0_4, %c0_5, %c0_6], %6 {strides = array<i32>} : memref<2x32x128xf32, #tpu.memory_space<vmem>>, vector<2x32x128xf32>,
    return
  }
  func.func @transform_0(%arg0: i32, %arg1: i32) -> (i32, i32, i32) {
    %c0_i32 = arith.constant 0 : i32
    %c0_i32_0 = arith.constant 0 : i32
    return %arg0, %c0_i32, %arg1 : i32, i32, i32
  }
  func.func @transform_1(%arg0: i32, %arg1: i32) -> (i32, i32) {
    %c0_i32 = arith.constant 0 : i32
    %c0_i32_0 = arith.constant 0 : i32
    return %c0_i32, %arg1 : i32, i32
  }
  func.func @transform_2(%arg0: i32, %arg1: i32) -> (i32, i32, i32) {
    %c0_i32 = arith.constant 0 : i32
    %c0_i32_0 = arith.constant 0 : i32
    return %arg0, %c0_i32, %arg1 : i32, i32, i32
  }
}

</mosaic_0001>

<bundles_post_ra>
// kernel: positional_encoder_forward.1
= control target key start
LH: loop header
LB: loop body
LE: loop exit
PB: predicated region body
PF: predicated region fallthrough
CT: control target
= control target key end

     0   :  { %s141_s4 = smov [#allocation3]   ;;  %s207_s0 = inlined_call_operand.vmem [shape: f32[2,32,128], index: 0, kind: input, shape index: {}]   ;;  %s208_s1 = inlined_call_operand.vmem [shape: f32[32,512], index: 1, kind: input, shape index: {}]   ;;  %s209_s2 = inlined_call_operand.hbm [shape: f32[2,32,128], index: 2, kind: output, shape index: {}]  }
   0x1   :  { %v45_v0 = vld [vmem:[%s208_s1] sm:$0xff]  ;;  %v59_v4 = vld [vmem:[%s207_s0 + $0x8] sm:$0xff]  ;;  %v60_v6 = vld [vmem:[%s207_s0 + $0x10] sm:$0xff]  ;;  %s99_s5 = sshll.u32 %s141_s4, 4  ;;  %s100_s5 = int_to_ptr.vmem [resolvable:$true] %s99_s5 }
   0x2   :  { %v58_v1 = vld [vmem:[%s207_s0] sm:$0xff]  ;;  %v71_v7 = vmul.f32 5.656854, %v59_v4  ;;  %v72_v8 = vmul.f32 5.656854, %v60_v6  ;;  %v61_v10 = vld [vmem:[%s207_s0 + $0x18] sm:$0xff] }
   0x3   :  { %v47_v2 = vld [vmem:[%s208_s1 + $0x20] sm:$0xff]  ;;  %v70_v3 = vmul.f32 5.656854, %v58_v1  ;;  %v73_v12 = vmul.f32 5.656854, %v61_v10  ;;  %v63_v14 = vld [vmem:[%s207_s0 + $0x28] sm:$0xff] }
   0x4   :  { %v49_v5 = vld [vmem:[%s208_s1 + $0x40] sm:$0xff]  ;;  %v64_v15 = vld [vmem:[%s207_s0 + $0x30] sm:$0xff]  ;;  %v79_v16 = vadd.f32 %v71_v7, %v47_v2  ;;  %v75_v19 = vmul.f32 5.656854, %v63_v14  ;;  %v65_v20 = vld [vmem:[%s207_s0 + $0x38] sm:$0xff] }
   0x5   :  { %v51_v9 = vld [vmem:[%s208_s1 + $0x60] sm:$0xff]  ;;  %v78_v11 = vadd.f32 %v70_v3, %v45_v0  ;;  %v80_v17 = vadd.f32 %v72_v8, %v49_v5  ;;  %v76_v22 = vmul.f32 5.656854, %v64_v15  ;;  %v77_v23 = vmul.f32 5.656854, %v65_v20 }
   0x6   :  { %v62_v13 = vld [vmem:[%s207_s0 + $0x20] sm:$0xff]  ;;  %v81_v21 = vadd.f32 %v73_v12, %v51_v9 }
   0x7   :  { %v74_v18 = vmul.f32 5.656854, %v62_v13  ;;  %86 = vst [vmem:[#allocation3] sm:$0xff] %v78_v11 }
   0x8   :  { %7 = vsyncpa [#allocation4], 0  ;;  %87 = vst [vmem:[#allocation3 + $0x8] sm:$0xff] %v79_v16  ;;  %v83_v25 = vadd.f32 %v75_v19, %v47_v2  ;;  %v84_v26 = vadd.f32 %v76_v22, %v49_v5  ;;  %v85_v27 = vadd.f32 %v77_v23, %v51_v9  ;;  %s117_s0 = scalar_lea.vmem %s100_s5, 1024  ;;  %p122_p1 = scmp.lt.s32.totalorder %s100_s5, %s100_s5 }
   0x9   :  { %88 = vst [vmem:[#allocation3 + $0x10] sm:$0xff] %v80_v17  ;;  %v82_v24 = vadd.f32 %v74_v18, %v45_v0  ;;  %89 = vst [vmem:[#allocation3 + $0x18] sm:$0xff] %v81_v21  ;;  %p118_p0 = scmp.ne.s32.totalorder %s100_s5, %s117_s0  ;;  %p123_p2 = scmp.lt.s32.totalorder %s117_s0, %s117_s0 }
   0xa   :  { %91 = vst [vmem:[#allocation3 + $0x28] sm:$0xff] %v83_v25  ;;  %92 = vst [vmem:[#allocation3 + $0x30] sm:$0xff] %v84_v26 }
   0xb   :  { %90 = vst [vmem:[#allocation3 + $0x20] sm:$0xff] %v82_v24  ;;  %93 = vst [vmem:[#allocation3 + $0x38] sm:$0xff] %v85_v27  ;;  %p124_p3 = por %p123_p2, %p122_p1 }
   0xd   :  { %p125_p4 = pnand %p124_p3, %p118_p0 }
   0xf   :  { %128 = shalt.err (!%p125_p4)
}
  0x10   :  { %s129_s8 = scalar_lea.hbm %s209_s2, 1024 }
  0x11   :  { %p130_p5 = scmp.ne.s32.totalorder %s209_s2, %s129_s8  ;;  %p133_p6 = scmp.lt.u32.totalorder %s129_s8, %s209_s2 }
  0x13   :  { %p135_p7 = pnand %p133_p6, %p130_p5 }
  0x15   :  { %138 = shalt.err (!%p135_p7)
}
  0x16   :  { %s142_s13 = smov 128   ;;  %s143_s14 = smov 8  }
  0x17   :  { %105 = dma.vmem_to_hbm [thread:$0]  %s100_s5, 1024, %s209_s2, [#allocation4], %s142_s13, %s142_s13, %s143_s14  }
  0x18   :  { %139 = dma.done.wait [#allocation4], 1024  }
  0x19   :  { %140 = vsyncadd [#allocation4], 4294966272 }
  0x1a   :  { %109 = vsyncpa [#allocation4], 1 }

</bundles_post_ra>
